<compile_context>
chip_gen: v5e
topology: v5e:2x2
jax: 0.10.0
libtpu: 0.0.40
codegen_flags: <defaults>
</compile_context>

<pallas_src>
import math
import jax
import jax.numpy as jnp
from jax.experimental import pallas as pl
from jax.experimental.pallas import tpu as pltpu

# small, shape-consistent config
S, N, E, H, FF = 8, 2, 32, 4, 64        # seq, batch, d_model, nhead, dim_feedforward
DH = E // H
M = N * S                               # folded token axis (n-major: row = n*S + s)
EPS = 1e-5                              # nn.LayerNorm default eps

# lane offsets inside the packed weight slab wa = [Wqkv | Wo | W1]  (E rows each)
OFF_QKV = 0
OFF_WO = 3 * E
OFF_W1 = 3 * E + E
WA_COLS = 3 * E + E + FF                # 96 + 32 + 64 = 192

# rows of the packed small-parameter slab (f32, padded to 3E lanes)
ROW_LN_W, ROW_LN_B, ROW_BQKV, ROW_BO, ROW_B1, ROW_B2 = 0, 1, 2, 3, 4, 5
PSLAB_ROWS, PSLAB_COLS = 6, 3 * E


def rztx_kernel(x_ref, wa_ref, w2_ref, pslab_ref, rw_ref, o_ref):
    """Single invocation over the whole (M = N*S, E) n-major token matrix.

    x_ref:     (M, E)        f32 activations
    wa_ref:    (E, WA_COLS)  bf16 packed [Wqkv (q pre-scaled) | Wo | W1]
    w2_ref:    (FF, E)       bf16
    pslab_ref: (6, 3E)       f32 packed [ln_w, ln_b, bqkv, bo, b1, b2] rows
    rw_ref:    (1,)          f32 in SMEM (resweight)
    """
    x = x_ref[...]                                                # (M, E) f32

    ln_w = pslab_ref[ROW_LN_W:ROW_LN_W + 1, :E]                   # (1, E)
    ln_b = pslab_ref[ROW_LN_B:ROW_LN_B + 1, :E]
    b_qkv = pslab_ref[ROW_BQKV:ROW_BQKV + 1, :3 * E]              # (1, 3E)
    b_o = pslab_ref[ROW_BO:ROW_BO + 1, :E]
    b_1 = pslab_ref[ROW_B1:ROW_B1 + 1, :FF]
    b_2 = pslab_ref[ROW_B2:ROW_B2 + 1, :E]

    # ---- pre_norm: LayerNorm over the feature dim (f32 VPU) ----
    mu = jnp.mean(x, axis=-1, keepdims=True)
    var = jnp.mean((x - mu) ** 2, axis=-1, keepdims=True)
    xn = (x - mu) * jax.lax.rsqrt(var + EPS) * ln_w + ln_b        # (M, E) f32
    xn_b = xn.astype(jnp.bfloat16)

    # ---- fused QKV: one (M,E)@(E,3E) bf16 matmul, f32 accumulation ----
    w_qkv = wa_ref[:, OFF_QKV:OFF_QKV + 3 * E]                    # (E, 3E) bf16
    qkv = jnp.dot(xn_b, w_qkv, preferred_element_type=jnp.float32) + b_qkv   # (M, 3E)

    # ---- split heads via lane slices; fold (N, S) back out of the row axis ----
    def heads(base):
        return [qkv[:, base + h * DH: base + (h + 1) * DH].reshape(N, S, DH)
                for h in range(H)]

    qb = jnp.stack(heads(0), axis=0).reshape(H * N, S, DH).astype(jnp.bfloat16)
    kb = jnp.stack(heads(E), axis=0).reshape(H * N, S, DH).astype(jnp.bfloat16)
    vb = jnp.stack(heads(2 * E), axis=0).reshape(H * N, S, DH).astype(jnp.bfloat16)

    # ---- attention: true (head, batch) batch dim -> per-batch S x S scores, no mask ----
    s = jnp.einsum("bqd,bkd->bqk", qb, kb,
                   preferred_element_type=jnp.float32)            # (H*N, S, S) f32
    s = s - jnp.max(s, axis=-1, keepdims=True)
    p = jnp.exp(s)
    p = p / jnp.sum(p, axis=-1, keepdims=True)                    # exact softmax (f32)
    ctx = jnp.einsum("bqk,bkd->bqd", p.astype(jnp.bfloat16), vb,
                     preferred_element_type=jnp.float32)          # (H*N, S, DH) f32

    # ---- output projection: lane-concat heads -> one (M,E)@(E,E) matmul ----
    ctx_m = jnp.concatenate(
        [ctx[h * N:(h + 1) * N].reshape(M, DH) for h in range(H)], axis=-1)  # (M, E)
    w_o = wa_ref[:, OFF_WO:OFF_WO + E]                            # (E, E) bf16
    attn = jnp.dot(ctx_m.astype(jnp.bfloat16), w_o,
                   preferred_element_type=jnp.float32) + b_o      # (M, E) f32

    rw = rw_ref[0]                                                # scalar from SMEM
    # src = src + dropout1(src2 * resweight); dropout is identity in eval
    src = xn + attn * rw

    # ---- feed-forward: linear2(dropout(relu(linear1(src)))) ----
    w_1 = wa_ref[:, OFF_W1:OFF_W1 + FF]                           # (E, FF) bf16
    h1 = jnp.dot(src.astype(jnp.bfloat16), w_1,
                 preferred_element_type=jnp.float32) + b_1        # (M, FF) f32
    h1 = jnp.maximum(h1, 0.0)                                     # relu
    ff = jnp.dot(h1.astype(jnp.bfloat16), w2_ref[...],
                 preferred_element_type=jnp.float32) + b_2        # (M, E) f32

    o_ref[...] = (src + ff * rw).astype(o_ref.dtype)
    # TODO(synk): Dropout layers are identity here (inference); no RNG dropout in kernel.


def pack_params(p):
    """Host-side, one-time packing of the raw (in, out) weights into kernel layout."""
    inv = 1.0 / math.sqrt(DH)
    w_qkv = jnp.concatenate([p["wq"] * inv, p["wk"], p["wv"]], axis=1)     # (E, 3E)
    b_qkv = jnp.concatenate([p["bq"] * inv, p["bk"], p["bv"]], axis=1)     # (1, 3E)

    # one bf16 weights slab for all E-row weights, one bf16 W2, one f32 bias slab
    wa = jnp.concatenate([w_qkv, p["wo"], p["w1"]], axis=1).astype(jnp.bfloat16)  # (E, 192)
    w2 = p["w2"].astype(jnp.bfloat16)                                              # (FF, E)

    def row(v):
        v = v.reshape(1, -1).astype(jnp.float32)
        return jnp.pad(v, ((0, 0), (0, PSLAB_COLS - v.shape[1])))

    pslab = jnp.concatenate(
        [row(p["ln_w"]), row(p["ln_b"]), row(b_qkv),
         row(p["bo"]), row(p["b1"]), row(p["b2"])], axis=0)                        # (6, 96)

    return {"wa": wa, "w2": w2, "pslab": pslab, "rw": p["rw"]}


def rztx_encoder_layer(src, pk):
    """src: (S, N, E) float32 (PyTorch seq-first). Returns (S, N, E)."""
    # n-major fold: each batch element becomes a contiguous row block of the token matrix
    x2d = jnp.transpose(src, (1, 0, 2)).reshape(M, E)

    vmem = pl.BlockSpec(memory_space=pltpu.MemorySpace.VMEM)
    smem = pl.BlockSpec(memory_space=pltpu.MemorySpace.SMEM)

    out = pl.pallas_call(
        rztx_kernel,
        out_shape=jax.ShapeDtypeStruct((M, E), jnp.float32),
        in_specs=[vmem, vmem, vmem, vmem, smem],
        out_specs=vmem,
    )(x2d, pk["wa"], pk["w2"], pk["pslab"], pk["rw"])
    return jnp.transpose(out.reshape(N, S, E), (1, 0, 2))


def ref_forward(src, p):
    """Pure-JAX f32 reference mirroring the PyTorch forward (eval mode)."""
    x = src                                                       # (S, N, E)
    mu = x.mean(-1, keepdims=True)
    var = ((x - mu) ** 2).mean(-1, keepdims=True)
    xn = (x - mu) / jnp.sqrt(var + EPS) * p["ln_w"][0] + p["ln_b"][0]

    q = (xn @ p["wq"] + p["bq"][0]) * (1.0 / math.sqrt(DH))
    k = xn @ p["wk"] + p["bk"][0]
    v = xn @ p["wv"] + p["bv"][0]
    qh = q.reshape(S, N, H, DH)
    kh = k.reshape(S, N, H, DH)
    vh = v.reshape(S, N, H, DH)
    s = jnp.einsum("snhd,tnhd->nhst", qh, kh)
    pr = jax.nn.softmax(s, axis=-1)
    o = jnp.einsum("nhst,tnhd->snhd", pr, vh).reshape(S, N, E)
    attn = o @ p["wo"] + p["bo"][0]

    rw = p["rw"][0]
    srcr = xn + attn * rw
    ff = jnp.maximum(srcr @ p["w1"] + p["b1"][0], 0.0) @ p["w2"] + p["b2"][0]
    return srcr + ff * rw


def make_params(key):
    ks = jax.random.split(key, 16)
    sc = 0.1
    # all weight matrices stored in (in, out) layout so the math is x @ W
    return {
        "ln_w": jnp.ones((1, E), jnp.float32),
        "ln_b": jnp.zeros((1, E), jnp.float32),
        "wq": jax.random.normal(ks[0], (E, E), jnp.float32) * sc,
        "bq": jax.random.normal(ks[1], (1, E), jnp.float32) * sc,
        "wk": jax.random.normal(ks[2], (E, E), jnp.float32) * sc,
        "bk": jax.random.normal(ks[3], (1, E), jnp.float32) * sc,
        "wv": jax.random.normal(ks[4], (E, E), jnp.float32) * sc,
        "bv": jax.random.normal(ks[5], (1, E), jnp.float32) * sc,
        "wo": jax.random.normal(ks[6], (E, E), jnp.float32) * sc,
        "bo": jax.random.normal(ks[7], (1, E), jnp.float32) * sc,
        "w1": jax.random.normal(ks[8], (E, FF), jnp.float32) * sc,
        "b1": jax.random.normal(ks[9], (1, FF), jnp.float32) * sc,
        "w2": jax.random.normal(ks[10], (FF, E), jnp.float32) * sc,
        "b2": jax.random.normal(ks[11], (1, E), jnp.float32) * sc,
        # NOTE: PyTorch inits resweight to 0 (which zeroes both residual branches);
        # we use a nonzero deterministic value so the kernel's hot path is exercised.
        "rw": jnp.full((1,), 0.5, jnp.float32),
    }


if __name__ == "__main__":
    key = jax.random.PRNGKey(0)
    k_src, k_par = jax.random.split(key)
    src = jax.random.normal(k_src, (S, N, E), jnp.float32)        # (seq, batch, d_model)
    params = make_params(k_par)
    packed = pack_params(params)                                  # one-time host packing

    fwd = jax.jit(rztx_encoder_layer)
    out = jax.block_until_ready(fwd(src, packed))
    ref = jax.block_until_ready(ref_forward(src, params))

    assert out.shape == (S, N, E)
    err = float(jnp.max(jnp.abs(out - ref)))
    # bf16 MXU operands (vs the all-f32 reference) dominate the error; expected
    # ~5e-3 at these magnitudes, 5e-2 gives ample headroom.
    assert err < 5e-2, err
    print("KERNEL_OK")
</pallas_src>

<mosaic_0001>
module attributes {stable_mosaic.version = 11 : i64} {
  func.func @rztx_kernel(%arg0: memref<16x32xf32, #tpu.memory_space<vmem>>, %arg1: memref<32x192xbf16, #tpu.memory_space<vmem>>, %arg2: memref<64x32xbf16, #tpu.memory_space<vmem>>, %arg3: memref<6x96xf32, #tpu.memory_space<vmem>>, %arg4: memref<1xf32, #tpu.memory_space<smem>>, %arg5: memref<16x32xf32, #tpu.memory_space<vmem>>) attributes {dimension_semantics = [], scalar_prefetch = 0 : i64, scratch_operands = 0 : i64, tpu.core_type = #tpu.core_type<tc>} {
    %c0 = arith.constant 0 : index
    %c0_0 = arith.constant 0 : index
    %0 = vector.load %arg0[%c0, %c0_0] : memref<16x32xf32, #tpu.memory_space<vmem>>, vector<16x32xf32>
    %c0_1 = arith.constant 0 : index
    %c0_2 = arith.constant 0 : index
    %1 = vector.load %arg3[%c0_1, %c0_2] : memref<6x96xf32, #tpu.memory_space<vmem>>, vector<1x32xf32>
    %c1 = arith.constant 1 : index
    %c0_3 = arith.constant 0 : index
    %2 = vector.load %arg3[%c1, %c0_3] : memref<6x96xf32, #tpu.memory_space<vmem>>, vector<1x32xf32>
    %c2 = arith.constant 2 : index
    %c0_4 = arith.constant 0 : index
    %3 = vector.load %arg3[%c2, %c0_4] : memref<6x96xf32, #tpu.memory_space<vmem>>, vector<1x96xf32>
    %c3 = arith.constant 3 : index
    %c0_5 = arith.constant 0 : index
    %4 = vector.load %arg3[%c3, %c0_5] : memref<6x96xf32, #tpu.memory_space<vmem>>, vector<1x32xf32>
    %c4 = arith.constant 4 : index
    %c0_6 = arith.constant 0 : index
    %5 = vector.load %arg3[%c4, %c0_6] : memref<6x96xf32, #tpu.memory_space<vmem>>, vector<1x64xf32>
    %c5 = arith.constant 5 : index
    %c0_7 = arith.constant 0 : index
    %6 = vector.load %arg3[%c5, %c0_7] : memref<6x96xf32, #tpu.memory_space<vmem>>, vector<1x32xf32>
    %cst = arith.constant dense<0.000000e+00> : vector<16xf32>
    %7 = vector.multi_reduction <add>, %0, %cst [1] : vector<16x32xf32> to vector<16xf32>
    %8 = vector.shape_cast %7 : vector<16xf32> to vector<16x1xf32>
    %cst_8 = arith.constant 3.200000e+01 : f32
    %9 = vector.broadcast %cst_8 : f32 to vector<16x1xf32>
    %10 = arith.divf %8, %9 : vector<16x1xf32>
    %11 = vector.broadcast %10 : vector<16x1xf32> to vector<16x32xf32>
    %12 = arith.subf %0, %11 : vector<16x32xf32>
    %13 = arith.mulf %12, %12 : vector<16x32xf32>
    %cst_9 = arith.constant dense<0.000000e+00> : vector<16xf32>
    %14 = vector.multi_reduction <add>, %13, %cst_9 [1] : vector<16x32xf32> to vector<16xf32>
    %15 = vector.shape_cast %14 : vector<16xf32> to vector<16x1xf32>
    %cst_10 = arith.constant 3.200000e+01 : f32
    %16 = vector.broadcast %cst_10 : f32 to vector<16x1xf32>
    %17 = arith.divf %15, %16 : vector<16x1xf32>
    %18 = vector.broadcast %10 : vector<16x1xf32> to vector<16x32xf32>
    %19 = arith.subf %0, %18 : vector<16x32xf32>
    %cst_11 = arith.constant 9.99999974E-6 : f32
    %20 = vector.broadcast %cst_11 : f32 to vector<16x1xf32>
    %21 = arith.addf %17, %20 : vector<16x1xf32>
    %22 = math.rsqrt %21 : vector<16x1xf32>
    %23 = vector.broadcast %22 : vector<16x1xf32> to vector<16x32xf32>
    %24 = arith.mulf %19, %23 : vector<16x32xf32>
    %25 = vector.broadcast %1 : vector<1x32xf32> to vector<16x32xf32>
    %26 = arith.mulf %24, %25 : vector<16x32xf32>
    %27 = vector.broadcast %2 : vector<1x32xf32> to vector<16x32xf32>
    %28 = arith.addf %26, %27 : vector<16x32xf32>
    %29 = arith.truncf %28 : vector<16x32xf32> to vector<16x32xbf16>
    %c0_12 = arith.constant 0 : index
    %c0_13 = arith.constant 0 : index
    %30 = vector.load %arg1[%c0_12, %c0_13] : memref<32x192xbf16, #tpu.memory_space<vmem>>, vector<32x96xbf16>
    %cst_14 = arith.constant dense<0.000000e+00> : vector<16x96xf32>
    %31 = tpu.matmul %29, %30, %cst_14 {dimension_numbers = #tpu.dot_dimension_numbers<[1], [0], [0], [1], [0, 0, 1, 1], [], []>} : vector<16x32xbf16>, vector<32x96xbf16>, vector<16x96xf32> -> vector<16x96xf32>
    %32 = vector.broadcast %3 : vector<1x96xf32> to vector<16x96xf32>
    %33 = arith.addf %31, %32 : vector<16x96xf32>
    %34 = vector.extract_strided_slice %33 {offsets = [0, 0], sizes = [16, 8], strides = [1, 1]} : vector<16x96xf32> to vector<16x8xf32>
    %35 = vector.shape_cast %34 : vector<16x8xf32> to vector<2x8x8xf32>
    %36 = vector.extract_strided_slice %33 {offsets = [0, 8], sizes = [16, 8], strides = [1, 1]} : vector<16x96xf32> to vector<16x8xf32>
    %37 = vector.shape_cast %36 : vector<16x8xf32> to vector<2x8x8xf32>
    %38 = vector.extract_strided_slice %33 {offsets = [0, 16], sizes = [16, 8], strides = [1, 1]} : vector<16x96xf32> to vector<16x8xf32>
    %39 = vector.shape_cast %38 : vector<16x8xf32> to vector<2x8x8xf32>
    %40 = vector.extract_strided_slice %33 {offsets = [0, 24], sizes = [16, 8], strides = [1, 1]} : vector<16x96xf32> to vector<16x8xf32>
    %41 = vector.shape_cast %40 : vector<16x8xf32> to vector<2x8x8xf32>
    %42 = vector.shape_cast %35 : vector<2x8x8xf32> to vector<1x2x8x8xf32>
    %43 = vector.shape_cast %37 : vector<2x8x8xf32> to vector<1x2x8x8xf32>
    %44 = vector.shape_cast %39 : vector<2x8x8xf32> to vector<1x2x8x8xf32>
    %45 = vector.shape_cast %41 : vector<2x8x8xf32> to vector<1x2x8x8xf32>
    %46 = tpu.concatenate %42, %43, %44, %45 in 0 : vector<1x2x8x8xf32>, vector<1x2x8x8xf32>, vector<1x2x8x8xf32>, vector<1x2x8x8xf32> -> vector<4x2x8x8xf32>
    %47 = vector.shape_cast %46 : vector<4x2x8x8xf32> to vector<8x8x8xf32>
    %48 = arith.truncf %47 : vector<8x8x8xf32> to vector<8x8x8xbf16>
    %49 = vector.extract_strided_slice %33 {offsets = [0, 32], sizes = [16, 8], strides = [1, 1]} : vector<16x96xf32> to vector<16x8xf32>
    %50 = vector.shape_cast %49 : vector<16x8xf32> to vector<2x8x8xf32>
    %51 = vector.extract_strided_slice %33 {offsets = [0, 40], sizes = [16, 8], strides = [1, 1]} : vector<16x96xf32> to vector<16x8xf32>
    %52 = vector.shape_cast %51 : vector<16x8xf32> to vector<2x8x8xf32>
    %53 = vector.extract_strided_slice %33 {offsets = [0, 48], sizes = [16, 8], strides = [1, 1]} : vector<16x96xf32> to vector<16x8xf32>
    %54 = vector.shape_cast %53 : vector<16x8xf32> to vector<2x8x8xf32>
    %55 = vector.extract_strided_slice %33 {offsets = [0, 56], sizes = [16, 8], strides = [1, 1]} : vector<16x96xf32> to vector<16x8xf32>
    %56 = vector.shape_cast %55 : vector<16x8xf32> to vector<2x8x8xf32>
    %57 = vector.shape_cast %50 : vector<2x8x8xf32> to vector<1x2x8x8xf32>
    %58 = vector.shape_cast %52 : vector<2x8x8xf32> to vector<1x2x8x8xf32>
    %59 = vector.shape_cast %54 : vector<2x8x8xf32> to vector<1x2x8x8xf32>
    %60 = vector.shape_cast %56 : vector<2x8x8xf32> to vector<1x2x8x8xf32>
    %61 = tpu.concatenate %57, %58, %59, %60 in 0 : vector<1x2x8x8xf32>, vector<1x2x8x8xf32>, vector<1x2x8x8xf32>, vector<1x2x8x8xf32> -> vector<4x2x8x8xf32>
    %62 = vector.shape_cast %61 : vector<4x2x8x8xf32> to vector<8x8x8xf32>
    %63 = arith.truncf %62 : vector<8x8x8xf32> to vector<8x8x8xbf16>
    %64 = vector.extract_strided_slice %33 {offsets = [0, 64], sizes = [16, 8], strides = [1, 1]} : vector<16x96xf32> to vector<16x8xf32>
    %65 = vector.shape_cast %64 : vector<16x8xf32> to vector<2x8x8xf32>
    %66 = vector.extract_strided_slice %33 {offsets = [0, 72], sizes = [16, 8], strides = [1, 1]} : vector<16x96xf32> to vector<16x8xf32>
    %67 = vector.shape_cast %66 : vector<16x8xf32> to vector<2x8x8xf32>
    %68 = vector.extract_strided_slice %33 {offsets = [0, 80], sizes = [16, 8], strides = [1, 1]} : vector<16x96xf32> to vector<16x8xf32>
    %69 = vector.shape_cast %68 : vector<16x8xf32> to vector<2x8x8xf32>
    %70 = vector.extract_strided_slice %33 {offsets = [0, 88], sizes = [16, 8], strides = [1, 1]} : vector<16x96xf32> to vector<16x8xf32>
    %71 = vector.shape_cast %70 : vector<16x8xf32> to vector<2x8x8xf32>
    %72 = vector.shape_cast %65 : vector<2x8x8xf32> to vector<1x2x8x8xf32>
    %73 = vector.shape_cast %67 : vector<2x8x8xf32> to vector<1x2x8x8xf32>
    %74 = vector.shape_cast %69 : vector<2x8x8xf32> to vector<1x2x8x8xf32>
    %75 = vector.shape_cast %71 : vector<2x8x8xf32> to vector<1x2x8x8xf32>
    %76 = tpu.concatenate %72, %73, %74, %75 in 0 : vector<1x2x8x8xf32>, vector<1x2x8x8xf32>, vector<1x2x8x8xf32>, vector<1x2x8x8xf32> -> vector<4x2x8x8xf32>
    %77 = vector.shape_cast %76 : vector<4x2x8x8xf32> to vector<8x8x8xf32>
    %78 = arith.truncf %77 : vector<8x8x8xf32> to vector<8x8x8xbf16>
    "tpu.trace_start"() <{level = 10 : i32, message = "bqd,bkd->bqk"}> : () -> ()
    %cst_15 = arith.constant dense<0.000000e+00> : vector<8x8x8xf32>
    %79 = tpu.matmul %48, %63, %cst_15 {dimension_numbers = #tpu.dot_dimension_numbers<[2], [2], [1], [1], [0, 0, 0, 1, 1, 1], [0], [0]>} : vector<8x8x8xbf16>, vector<8x8x8xbf16>, vector<8x8x8xf32> -> vector<8x8x8xf32>
    "tpu.trace_stop"() : () -> ()
    %cst_16 = arith.constant dense<0xFF800000> : vector<8x8xf32>
    %80 = vector.multi_reduction <maximumf>, %79, %cst_16 [2] : vector<8x8x8xf32> to vector<8x8xf32>
    %81 = vector.shape_cast %80 : vector<8x8xf32> to vector<8x8x1xf32>
    %82 = vector.broadcast %81 : vector<8x8x1xf32> to vector<8x8x8xf32>
    %83 = arith.subf %79, %82 : vector<8x8x8xf32>
    %84 = math.exp %83 : vector<8x8x8xf32>
    %cst_17 = arith.constant dense<0.000000e+00> : vector<8x8xf32>
    %85 = vector.multi_reduction <add>, %84, %cst_17 [2] : vector<8x8x8xf32> to vector<8x8xf32>
    %86 = vector.shape_cast %85 : vector<8x8xf32> to vector<8x8x1xf32>
    %87 = vector.broadcast %86 : vector<8x8x1xf32> to vector<8x8x8xf32>
    %88 = arith.divf %84, %87 : vector<8x8x8xf32>
    %89 = arith.truncf %88 : vector<8x8x8xf32> to vector<8x8x8xbf16>
    "tpu.trace_start"() <{level = 10 : i32, message = "bqk,bkd->bqd"}> : () -> ()
    %cst_18 = arith.constant dense<0.000000e+00> : vector<8x8x8xf32>
    %90 = tpu.matmul %89, %78, %cst_18 {dimension_numbers = #tpu.dot_dimension_numbers<[2], [1], [1], [2], [0, 0, 0, 1, 1, 2], [0], [0]>} : vector<8x8x8xbf16>, vector<8x8x8xbf16>, vector<8x8x8xf32> -> vector<8x8x8xf32>
    "tpu.trace_stop"() : () -> ()
    %91 = vector.extract_strided_slice %90 {offsets = [0, 0, 0], sizes = [2, 8, 8], strides = [1, 1, 1]} : vector<8x8x8xf32> to vector<2x8x8xf32>
    %92 = vector.shape_cast %91 : vector<2x8x8xf32> to vector<16x8xf32>
    %93 = vector.extract_strided_slice %90 {offsets = [2, 0, 0], sizes = [2, 8, 8], strides = [1, 1, 1]} : vector<8x8x8xf32> to vector<2x8x8xf32>
    %94 = vector.shape_cast %93 : vector<2x8x8xf32> to vector<16x8xf32>
    %95 = vector.extract_strided_slice %90 {offsets = [4, 0, 0], sizes = [2, 8, 8], strides = [1, 1, 1]} : vector<8x8x8xf32> to vector<2x8x8xf32>
    %96 = vector.shape_cast %95 : vector<2x8x8xf32> to vector<16x8xf32>
    %97 = vector.extract_strided_slice %90 {offsets = [6, 0, 0], sizes = [2, 8, 8], strides = [1, 1, 1]} : vector<8x8x8xf32> to vector<2x8x8xf32>
    %98 = vector.shape_cast %97 : vector<2x8x8xf32> to vector<16x8xf32>
    %99 = tpu.concatenate %92, %94, %96, %98 in 1 : vector<16x8xf32>, vector<16x8xf32>, vector<16x8xf32>, vector<16x8xf32> -> vector<16x32xf32>
    %c0_19 = arith.constant 0 : index
    %c96 = arith.constant 96 : index
    %100 = vector.load %arg1[%c0_19, %c96] : memref<32x192xbf16, #tpu.memory_space<vmem>>, vector<32x32xbf16>
    %101 = arith.truncf %99 : vector<16x32xf32> to vector<16x32xbf16>
    %cst_20 = arith.constant dense<0.000000e+00> : vector<16x32xf32>
    %102 = tpu.matmul %101, %100, %cst_20 {dimension_numbers = #tpu.dot_dimension_numbers<[1], [0], [0], [1], [0, 0, 1, 1], [], []>} : vector<16x32xbf16>, vector<32x32xbf16>, vector<16x32xf32> -> vector<16x32xf32>
    %103 = vector.broadcast %4 : vector<1x32xf32> to vector<16x32xf32>
    %104 = arith.addf %102, %103 : vector<16x32xf32>
    %c0_21 = arith.constant 0 : index
    %105 = memref.load %arg4[%c0_21] : memref<1xf32, #tpu.memory_space<smem>>
    %106 = vector.broadcast %105 : f32 to vector<16x32xf32>
    %107 = arith.mulf %104, %106 : vector<16x32xf32>
    %108 = arith.addf %28, %107 : vector<16x32xf32>
    %c0_22 = arith.constant 0 : index
    %c128 = arith.constant 128 : index
    %109 = vector.load %arg1[%c0_22, %c128] : memref<32x192xbf16, #tpu.memory_space<vmem>>, vector<32x64xbf16>
    %110 = arith.truncf %108 : vector<16x32xf32> to vector<16x32xbf16>
    %cst_23 = arith.constant dense<0.000000e+00> : vector<16x64xf32>
    %111 = tpu.matmul %110, %109, %cst_23 {dimension_numbers = #tpu.dot_dimension_numbers<[1], [0], [0], [1], [0, 0, 1, 1], [], []>} : vector<16x32xbf16>, vector<32x64xbf16>, vector<16x64xf32> -> vector<16x64xf32>
    %112 = vector.broadcast %5 : vector<1x64xf32> to vector<16x64xf32>
    %113 = arith.addf %111, %112 : vector<16x64xf32>
    %cst_24 = arith.constant 0.000000e+00 : f32
    %114 = vector.broadcast %cst_24 : f32 to vector<16x64xf32>
    %115 = arith.maximumf %113, %114 : vector<16x64xf32>
    %116 = arith.truncf %115 : vector<16x64xf32> to vector<16x64xbf16>
    %c0_25 = arith.constant 0 : index
    %c0_26 = arith.constant 0 : index
    %117 = vector.load %arg2[%c0_25, %c0_26] : memref<64x32xbf16, #tpu.memory_space<vmem>>, vector<64x32xbf16>
    %cst_27 = arith.constant dense<0.000000e+00> : vector<16x32xf32>
    %118 = tpu.matmul %116, %117, %cst_27 {dimension_numbers = #tpu.dot_dimension_numbers<[1], [0], [0], [1], [0, 0, 1, 1], [], []>} : vector<16x64xbf16>, vector<64x32xbf16>, vector<16x32xf32> -> vector<16x32xf32>
    %119 = vector.broadcast %6 : vector<1x32xf32> to vector<16x32xf32>
    %120 = arith.addf %118, %119 : vector<16x32xf32>
    %121 = vector.broadcast %105 : f32 to vector<16x32xf32>
    %122 = arith.mulf %120, %121 : vector<16x32xf32>
    %123 = arith.addf %108, %122 : vector<16x32xf32>
    %c0_28 = arith.constant 0 : index
    %c0_29 = arith.constant 0 : index
    %124 = vector.load %arg5[%c0_28, %c0_29] : memref<16x32xf32, #tpu.memory_space<vmem>>, vector<16x32xf32>
    tpu.vector_store %arg5[%c0_28, %c0_29], %123 {strides = array<i32>} : memref<16x32xf32, #tpu.memory_space<vmem>>, vector<16x32xf32>,
    return
  }
}

</mosaic_0001>

<bundles_post_ra>
// kernel: rztx_encoder_layer.1
= control target key start
LH: loop header
LB: loop body
LE: loop exit
PB: predicated region body
PF: predicated region fallthrough
CT: control target
= control target key end

     0   :  { %vm30_vm0 = vcmask 261120   ;;  %v1028_v4 = vmov 32.0   ;;  %s1029_s10 = smov 104   ;;  %s1030_s11 = smov 120   ;;  %vm156_vm8 = vcmask 64512   ;;  %vm549_vm9 = vcmask 1043456   ;;  %s1310_s0 = inlined_call_operand.vmem [shape: f32[16,32], index: 0, kind: input, shape index: {}]   ;;  %s1311_s3 = inlined_call_operand.vmem [shape: f32[6,96], index: 3, kind: input, shape index: {}]   ;;  %s1312_s1 = inlined_call_operand.vmem [shape: bf16[32,192], index: 1, kind: input, shape index: {}]   ;;  %s1313_s4 = inlined_call_operand.<no memory space> [shape: f32[1], index: 4, kind: input, shape index: {}]   ;;  %s1314_s2 = inlined_call_operand.vmem [shape: bf16[64,32], index: 2, kind: input, shape index: {}]   ;;  %s1315_s5 = inlined_call_operand.vmem [shape: f32[16,32], index: 5, kind: output, shape index: {}]  }
   0x1   :  { %v22_v0 = vld [vmem:[%s1310_s0] sm:$0xff]  ;;  %v23_v2 = vld [vmem:[%s1310_s0 + $0x8] sm:$0xff]  ;;  %990 = vrcp.f32 %v1028_v4  ;;  %v895_v21 = vld [vmem:[%s1312_s1 + $0x10] sm:$0xf]  ;;  %s1031_s12 = smov 112   ;;  %s1032_s13 = smov 96  }
   0x2   :  { %v31_v1 = vsel %vm30_vm0, %v22_v0, 0.0  ;;  %v34_v3 = vsel %vm30_vm0, %v23_v2, 0.0  ;;  %v950_v22 = vld [vmem:[%s1312_s1 + $0x14] sm:$0xf0]  ;;  %v891_v24 = vld [vmem:[%s1312_s1] sm:$0xf] }
   0x3   :  { %32 = vadd.xlane.f32.xlu0 %v31_v1  ;;  %v896_v23 = vor.u32 %v950_v22, %v895_v21  ;;  %v949_v25 = vld [vmem:[%s1312_s1 + $0x4] sm:$0xf0]  ;;  %v984_v46 = vld [vmem:[%s1311_s3] ss:$0 sm:$0xff]  ;;  %v985_v51 = vld [vmem:[%s1311_s3 + $0x1] ss:$0 sm:$0xff] }
   0x4   :  { %v892_v27 = vor.u32 %v949_v25, %v891_v24  ;;  %v986_v56 = vld [vmem:[%s1311_s3 + $0x2] ss:$0 sm:$0xff]  ;;  %s1033_s14 = smov 64   ;;  %s1034_s19 = smov 32  }
   0x5   :  { %115 = vmatpush.bf16.msra.mxu0 %v896_v23  ;;  %s1035_s20 = smov 16   ;;  %s1036_s21 = smov 8  }
   0x6   :  { %s1037_s25 = smov 24  }
   0x7   :  { %v991_v5 = vpop.eup %990 }
   0x8   :  { %v38_v6 = vmul.f32 32.0, %v991_v5  ;;  %vm42_vm1 = vweird.f32 %v991_v5 }
   0x9   :  { %116 = vmatpush.bf16.msra.mxu0 %v892_v27 }
   0xa   :  { %v39_v7 = vsub.f32 1.0, %v38_v6 }
   0xb   :  { %35 = vadd.xlane.f32.xlu0 %v34_v3 }
   0xc   :  { %v40_v8 = vmul.f32 %v991_v5, %v39_v7 }
   0xe   :  { %v41_v9 = vadd.f32 %v991_v5, %v40_v8 }
  0x10   :  { %v43_v10 = vsel %vm42_vm1, %v991_v5, %v41_v9 }
  0x76   :  { %v33_v11 = vpop.xlane.xlu0 %32 }
  0x77   :  { %v44_v12 = vmul.f32 %v43_v10, %v33_v11 }
  0x79   :  { %v46_v13 = vsub.f32 %v22_v0, %v44_v12 }
  0x7b   :  { %v48_v14 = vmul.f32 %v46_v13, %v46_v13 }
  0x7d   :  { %v50_v15 = vsel %vm30_vm0, %v48_v14, 0.0 }
  0x7e   :  { %51 = vadd.xlane.f32.xlu1 %v50_v15  ;;  %v36_v16 = vpop.xlane.xlu0 %35 }
  0x7f   :  { %v45_v17 = vmul.f32 %v43_v10, %v36_v16 }
  0x81   :  { %v47_v18 = vsub.f32 %v23_v2, %v45_v17 }
  0x83   :  { %v49_v19 = vmul.f32 %v47_v18, %v47_v18 }
  0x85   :  { %v53_v20 = vsel %vm30_vm0, %v49_v19, 0.0 }
  0x86   :  { %54 = vadd.xlane.f32.xlu1 %v53_v20 }
  0xf1   :  { %v52_v26 = vpop.xlane.xlu1 %51 }
  0xf2   :  { %v56_v28 = vmul.f32 %v52_v26, %v43_v10 }
  0xf4   :  { %v58_v29 = vadd.f32 1e-05, %v56_v28 }
  0xf6   :  { %992 = vrsqrt.f32 %v58_v29  ;;  %vm66_vm3 = vweird.f32 %v58_v29 }
  0xf9   :  { %v55_v30 = vpop.xlane.xlu1 %54 }
  0xfa   :  { %v57_v31 = vmul.f32 %v55_v30, %v43_v10 }
  0xfc   :  { %v993_v32 = vpop.eup %992  ;;  %v59_v33 = vadd.f32 1e-05, %v57_v31 }
  0xfd   :  { %v61_v34 = vmul.f32 %v993_v32, %v58_v29  ;;  %vm67_vm2 = vweird.f32 %v993_v32 }
  0xfe   :  { %994 = vrsqrt.f32 %v59_v33  ;;  %vm68_vm4 = vmor %vm66_vm3, %vm67_vm2  ;;  %vm76_vm6 = vweird.f32 %v59_v33 }
  0xff   :  { %v62_v35 = vmul.f32 %v993_v32, %v61_v34 }
 0x101   :  { %v63_v36 = vmul.f32 0.5, %v62_v35 }
 0x103   :  { %v64_v37 = vsub.f32 1.5, %v63_v36 }
 0x104   :  { %v995_v38 = vpop.eup %994 }
 0x105   :  { %v65_v39 = vmul.f32 %v993_v32, %v64_v37  ;;  %v71_v40 = vmul.f32 %v995_v38, %v59_v33  ;;  %vm77_vm5 = vweird.f32 %v995_v38 }
 0x106   :  { %vm78_vm7 = vmor %vm76_vm6, %vm77_vm5 }
 0x107   :  { %v72_v41 = vmul.f32 %v995_v38, %v71_v40  ;;  %v69_v42 = vsel %vm68_vm4, %v993_v32, %v65_v39 }
 0x108   :  { %v80_v45 = vmul.f32 %v69_v42, %v46_v13 }
 0x109   :  { %v73_v43 = vmul.f32 0.5, %v72_v41 }
 0x10a   :  { %v83_v50 = vmul.f32 %v984_v46, %v80_v45 }
 0x10b   :  { %v74_v44 = vsub.f32 1.5, %v73_v43 }
 0x10c   :  { %v1096_v53 = vadd.f32 %v985_v51, %v83_v50 }
 0x10d   :  { %v75_v47 = vmul.f32 %v995_v38, %v74_v44 }
 0x10f   :  { %v79_v48 = vsel %vm78_vm7, %v995_v38, %v75_v47 }
 0x110   :  { %v81_v49 = vmul.f32 %v79_v48, %v47_v18 }
 0x112   :  { %v84_v52 = vmul.f32 %v984_v46, %v81_v49 }
 0x114   :  { %v1098_v54 = vadd.f32 %v985_v51, %v84_v52 }
 0x116   :  { %v88_v55 = vpack.c.bf16 %v1098_v54, %v1096_v53 }
 0x118   :  { %897 = vmatmul.msk.bf16.vlgmr.msra.gmra.mxu0 %vm30_vm0, %v88_v55 }
 0x195   :  { %v118_v57 = vpop.f32.mrf.mxu0 }
 0x196   :  { %v119_v58 = vadd.f32 %v986_v56, %v118_v57 }
 0x198   :  { %137 = vrot.lane.b32.xlu1 %v119_v58, %s1029_s10  ;;  %125 = vrot.lane.b32.xlu2 %v119_v58, %s1030_s11  ;;  %v143_v0 = vpack.c.bf16 %v119_v58, %v119_v58 }
 0x19a   :  { %v152_v1 = vunpack.c.l.b16 %v143_v0 }
 0x19c   :  { %v1107_v2 = vpack.c.b16 %v152_v1, %v152_v1 }
 0x19d   :  { %v120_v59 = vpop.f32.mrf.mxu0 }
 0x19e   :  { %v121_v60 = vadd.f32 %v986_v56, %v120_v59 }
 0x1a0   :  { %133 = vrot.lane.b32.xlu0 %v121_v60, %s1031_s12  ;;  %127 = vrot.lane.b32.xlu2 %v121_v60, %s1030_s11  ;;  %v144_v61 = vpack.c.bf16 %v121_v60, %v121_v60 }
 0x1a2   :  { %v177_v62 = vunpack.c.l.b16 %v144_v61 }
 0x1a4   :  { %v178_v63 = vpack.c.b16 %v177_v62, %v177_v62 }
 0x1a8   :  { %131 = vrot.lane.b32.xlu2 %v119_v58, %s1031_s12 }
 0x1b0   :  { %139 = vrot.lane.b32.xlu2 %v121_v60, %s1029_s10 }
 0x1b8   :  { %179 = vrot.lane.b32.xlu2 %v178_v63, %s1032_s13 }
 0x1c0   :  { %154 = vrot.lane.b32.xlu2 %v1107_v2, %s1032_s13 }
 0x1f2   :  { %v126_v3 = vpop.permute.xlu2 %125 }
 0x1f3   :  { %v145_v4 = vpack.c.bf16 %v126_v3, %v126_v3 }
 0x1f5   :  { %v201_v5 = vunpack.c.l.b16 %v145_v4 }
 0x1f7   :  { %v1111_v6 = vpack.c.b16 %v201_v5, %v201_v5 }
 0x1f9   :  { %203 = vrot.lane.b32.xlu0 %v1111_v6, %s1032_s13 }
 0x1fa   :  { %v128_v7 = vpop.permute.xlu2 %127 }
 0x1fb   :  { %v146_v8 = vpack.c.bf16 %v128_v7, %v128_v7 }
 0x1fd   :  { %v225_v9 = vunpack.c.l.b16 %v146_v8 }
 0x1ff   :  { %v1115_v10 = vpack.c.b16 %v225_v9, %v225_v9 }
 0x201   :  { %227 = vrot.lane.b32.xlu1 %v1115_v10, %s1032_s13 }
 0x202   :  { %v132_v11 = vpop.permute.xlu2 %131 }
 0x203   :  { %v147_v12 = vpack.c.bf16 %v132_v11, %v132_v11 }
 0x205   :  { %v249_v13 = vunpack.c.l.b16 %v147_v12 }
 0x207   :  { %v1119_v14 = vpack.c.b16 %v249_v13, %v249_v13 }
 0x209   :  { %251 = vrot.lane.b32.xlu1 %v1119_v14, %s1032_s13 }
 0x20a   :  { %v138_v15 = vpop.permute.xlu1 %137  ;;  %v140_v16 = vpop.permute.xlu2 %139 }
 0x20b   :  { %v149_v17 = vpack.c.bf16 %v138_v15, %v138_v15  ;;  %v150_v25 = vpack.c.bf16 %v140_v16, %v140_v16 }
 0x20d   :  { %v297_v18 = vunpack.c.l.b16 %v149_v17  ;;  %v321_v28 = vunpack.c.l.b16 %v150_v25 }
 0x20f   :  { %v1123_v19 = vpack.c.b16 %v297_v18, %v297_v18  ;;  %v1134_v30 = vpack.c.b16 %v321_v28, %v321_v28 }
 0x211   :  { %299 = vrot.lane.b32.xlu2 %v1123_v19, %s1032_s13 }
 0x212   :  { %v134_v20 = vpop.permute.xlu0 %133  ;;  %v180_v21 = vpop.permute.xlu2 %179 }
 0x213   :  { %v148_v22 = vpack.c.bf16 %v134_v20, %v134_v20  ;;  %v185_v23 = vsel %vm156_vm8, %v180_v21, 0 }
 0x214   :  { %194 = vmatpush.bf16.xpose.msra.mxu2 %v185_v23 }
 0x215   :  { %v273_v24 = vunpack.c.l.b16 %v148_v22 }
 0x217   :  { %v1128_v26 = vpack.c.b16 %v273_v24, %v273_v24 }
 0x219   :  { %275 = vrot.lane.b32.xlu0 %v1128_v26, %s1032_s13 }
 0x21a   :  { %v155_v27 = vpop.permute.xlu2 %154 }
 0x21b   :  { %899 = vmatmul.msk.bf16.vlgmr.msra.gmra.mxu2 %vm156_vm8, %v144_v61  ;;  %v161_v29 = vsel %vm156_vm8, %v155_v27, 0 }
 0x21c   :  { %170 = vmatpush.bf16.xpose.msra.mxu1 %v161_v29 }
 0x221   :  { %323 = vrot.lane.b32.xlu0 %v1134_v30, %s1032_s13 }
 0x223   :  { %898 = vmatmul.msk.bf16.vlgmr.msra.gmra.mxu1 %vm156_vm8, %v143_v0 }
 0x229   :  { %566 = vrot.lane.b32.xlu0 %v178_v63, %s1033_s14 }
 0x26b   :  { %v204_v31 = vpop.permute.xlu0 %203  ;;  %v300_v32 = vpop.permute.xlu2 %299 }
 0x26c   :  { %v209_v33 = vsel %vm156_vm8, %v204_v31, 0  ;;  %v305_v34 = vsel %vm156_vm8, %v300_v32, 0 }
 0x26d   :  { %218 = vmatpush.bf16.xpose.msra.mxu3 %v209_v33 }
 0x273   :  { %v228_v35 = vpop.permute.xlu1 %227 }
 0x274   :  { %900 = vmatmul.msk.bf16.vlgmr.msra.gmra.mxu3 %vm156_vm8, %v145_v4  ;;  %v233_v36 = vsel %vm156_vm8, %v228_v35, 0 }
 0x275   :  { %314 = vmatpush.bf16.xpose.msrb.mxu3 %v305_v34  ;;  %242 = vmatpush.bf16.xpose.msrb.mxu0 %v233_v36 }
 0x27b   :  { %v252_v37 = vpop.permute.xlu1 %251 }
 0x27c   :  { %901 = vmatmul.msk.bf16.vlgmr.msrb.gmra.mxu0 %vm156_vm8, %v146_v8  ;;  %v257_v38 = vsel %vm156_vm8, %v252_v37, 0 }
 0x27d   :  { %266 = vmatpush.bf16.xpose.msrb.mxu1 %v257_v38 }
 0x284   :  { %902 = vmatmul.msk.bf16.vlgmr.msrb.gmra.mxu1 %vm156_vm8, %v147_v12  ;;  %904 = vmatmul.msk.bf16.vlgmr.msrb.gmra.mxu3 %vm156_vm8, %v149_v17 }
 0x28b   :  { %v276_v39 = vpop.permute.xlu0 %275 }
 0x28c   :  { %v281_v40 = vsel %vm156_vm8, %v276_v39, 0 }
 0x28d   :  { %290 = vmatpush.bf16.xpose.msrb.mxu2 %v281_v40 }
 0x293   :  { %v324_v41 = vpop.permute.xlu0 %323 }
 0x294   :  { %v329_v42 = vsel %vm156_vm8, %v324_v41, 0  ;;  %903 = vmatmul.msk.bf16.vlgmr.msrb.gmra.mxu2 %vm156_vm8, %v148_v22 }
 0x295   :  { %338 = vmatpush.bf16.xpose.msra.mxu0 %v329_v42 }
 0x29b   :  { %v567_v43 = vpop.permute.xlu0 %566 }
 0x29c   :  { %v572_v44 = vsel %vm549_vm9, %v567_v43, 0  ;;  %905 = vmatmul.msk.bf16.vlgmr.msra.gmra.mxu0 %vm156_vm8, %v150_v25 }
 0x29d   :  { %581 = vmatpush.bf16.msra.mxu2 %v572_v44 }
 0x29e   :  { %v196_v45 = vpop.f32.mrf.mxu2 }
 0x29f   :  { %v347_v46 = vsel %vm156_vm8, %v196_v45, -inf }
 0x2a0   :  { %348 = vmax.xlane.f32.xlu2 %v347_v46  ;;  %v172_v47 = vpop.f32.mrf.mxu1 }
 0x2a1   :  { %v344_v48 = vsel %vm156_vm8, %v172_v47, -inf }
 0x2a2   :  { %345 = vmax.xlane.f32.xlu0 %v344_v48 }
 0x2a6   :  { %v198_v49 = vpop.f32.mrf.mxu2 }
 0x2a8   :  { %v174_v50 = vpop.f32.mrf.mxu1 }
 0x2f7   :  { %v220_v51 = vpop.f32.mrf.mxu3 }
 0x2f8   :  { %v350_v52 = vsel %vm156_vm8, %v220_v51, -inf }
 0x2f9   :  { %v244_v55 = vpop.f32.mrf.mxu0  ;;  %351 = vmax.xlane.f32.xlu1 %v350_v52 }
 0x2fa   :  { %v353_v63 = vsel %vm156_vm8, %v244_v55, -inf }
 0x2ff   :  { %v222_v56 = vpop.f32.mrf.mxu3 }
 0x301   :  { %v246_v57 = vpop.f32.mrf.mxu0  ;;  %v268_v58 = vpop.f32.mrf.mxu1 }
 0x302   :  { %v356_v59 = vsel %vm156_vm8, %v268_v58, -inf }
 0x303   :  { %357 = vmax.xlane.f32.xlu2 %v356_v59 }
 0x307   :  { %v316_v60 = vpop.f32.mrf.mxu3 }
 0x308   :  { %v362_v61 = vsel %vm156_vm8, %v316_v60, -inf }
 0x309   :  { %v270_v62 = vpop.f32.mrf.mxu1  ;;  %363 = vmax.xlane.f32.xlu0 %v362_v61 }
 0x30b   :  { %354 = vmax.xlane.f32.xlu2 %v353_v63 }
 0x30f   :  { %v318_v0 = vpop.f32.mrf.mxu3 }
 0x313   :  { %v349_v16 = vpop.xlane.xlu2 %348 }
 0x315   :  { %v346_v1 = vpop.xlane.xlu0 %345 }
 0x316   :  { %v368_v3 = vsub.f32 %v172_v47, %v346_v1 }
 0x317   :  { %v1159_v4 = vpop.f32.mrf.mxu2 }
 0x318   :  { %v376_v5 = vmul.f32 1.442695, %v368_v3  ;;  %v359_v13 = vsel %vm156_vm8, %v1159_v4, -inf }
 0x319   :  { %v1161_v7 = vpop.f32.mrf.mxu0 }
 0x31a   :  { %996 = vpow2.f32 %v376_v5  ;;  %v365_v15 = vsel %vm156_vm8, %v1161_v7, -inf }
 0x31d   :  { %544 = vrot.lane.b32.xlu0 %v1107_v2, %s1033_s14  ;;  %v369_v2 = vsub.f32 %v196_v45, %v349_v16 }
 0x31f   :  { %v294_v8 = vpop.f32.mrf.mxu2  ;;  %v378_v17 = vmul.f32 1.442695, %v369_v2 }
 0x320   :  { %v1165_v9 = vpop.eup %996 }
 0x321   :  { %v342_v11 = vpop.f32.mrf.mxu0  ;;  %v392_v12 = vsel %vm156_vm8, %v1165_v9, 0.0  ;;  %998 = vpow2.f32 %v378_v17 }
 0x322   :  { %393 = vadd.xlane.f32.xlu1 %v392_v12 }
 0x323   :  { %587 = vrot.lane.b32.xlu2 %v1111_v6, %s1033_s14 }
 0x327   :  { %v1175_v18 = vpop.eup %998 }
 0x328   :  { %v395_v20 = vsel %vm156_vm8, %v1175_v18, 0.0 }
 0x32a   :  { %360 = vmax.xlane.f32.xlu1 %v359_v13 }
 0x332   :  { %366 = vmax.xlane.f32.xlu1 %v365_v15 }
 0x347   :  { %396 = vadd.xlane.f32.xlu0 %v395_v20 }
 0x36c   :  { %v352_v21 = vpop.xlane.xlu1 %351 }
 0x36d   :  { %v370_v6 = vsub.f32 %v220_v51, %v352_v21 }
 0x36f   :  { %v380_v22 = vmul.f32 1.442695, %v370_v6 }
 0x371   :  { %1000 = vpow2.f32 %v380_v22 }
 0x376   :  { %v358_v23 = vpop.xlane.xlu2 %357 }
 0x377   :  { %v1179_v24 = vpop.eup %1000  ;;  %v372_v25 = vsub.f32 %v268_v58, %v358_v23 }
 0x378   :  { %v398_v27 = vsel %vm156_vm8, %v1179_v24, 0.0 }
 0x379   :  { %v384_v28 = vmul.f32 1.442695, %v372_v25  ;;  %399 = vadd.xlane.f32.xlu2 %v398_v27 }
 0x37b   :  { %1002 = vpow2.f32 %v384_v28 }
 0x37c   :  { %v364_v29 = vpop.xlane.xlu0 %363 }
 0x37d   :  { %v374_v31 = vsub.f32 %v316_v60, %v364_v29 }
 0x37e   :  { %v355_v32 = vpop.xlane.xlu2 %354 }
 0x37f   :  { %v388_v33 = vmul.f32 1.442695, %v374_v31  ;;  %v371_v34 = vsub.f32 %v244_v55, %v355_v32 }
 0x381   :  { %v1183_v35 = vpop.eup %1002  ;;  %1004 = vpow2.f32 %v388_v33  ;;  %v382_v36 = vmul.f32 1.442695, %v371_v34 }
 0x382   :  { %v404_v37 = vsel %vm156_vm8, %v1183_v35, 0.0 }
 0x383   :  { %1006 = vpow2.f32 %v382_v36  ;;  %405 = vadd.xlane.f32.xlu1 %v404_v37 }
 0x386   :  { %v588_v38 = vpop.permute.xlu2 %587 }
 0x387   :  { %v1187_v39 = vpop.eup %1004  ;;  %v593_v40 = vsel %vm549_vm9, %v588_v38, 0 }
 0x388   :  { %602 = vmatpush.bf16.msra.mxu3 %v593_v40  ;;  %v410_v42 = vsel %vm156_vm8, %v1187_v39, 0.0 }
 0x389   :  { %v1190_v41 = vpop.eup %1006 }
 0x38a   :  { %v401_v43 = vsel %vm156_vm8, %v1190_v41, 0.0 }
 0x38b   :  { %411 = vadd.xlane.f32.xlu1 %v410_v42  ;;  %402 = vadd.xlane.f32.xlu0 %v401_v43 }
 0x38f   :  { %v545_v44 = vpop.permute.xlu0 %544 }
 0x390   :  { %v551_v45 = vsel %vm549_vm9, %v545_v44, 0 }
 0x391   :  { %560 = vmatpush.bf16.msra.mxu1 %v551_v45 }
 0x395   :  { %v394_v46 = vpop.xlane.xlu1 %393 }
 0x396   :  { %1008 = vrcp.f32 %v394_v46  ;;  %v427_v52 = vand.u32 2147483648, %v394_v46  ;;  %v425_v57 = vand.u32 2147483647, %v394_v46  ;;  %vm421_vm11 = vweird.f32 %v394_v46 }
 0x398   :  { %v428_v59 = vor.u32 1.1754944e-38, %v427_v52  ;;  %vm426_vm13 = vcmp.eq.f32.partialorder %v425_v57, 8.507059e+37 }
 0x39c   :  { %v1009_v47 = vpop.eup %1008 }
 0x39d   :  { %v417_v48 = vmul.f32 %v1009_v47, %v394_v46  ;;  %v361_v49 = vpop.xlane.xlu1 %360  ;;  %vm422_vm10 = vweird.f32 %v1009_v47 }
 0x39e   :  { %v373_v50 = vsub.f32 %v1159_v4, %v361_v49  ;;  %vm423_vm12 = vmor %vm421_vm11, %vm422_vm10 }
 0x39f   :  { %v418_v51 = vsub.f32 1.0, %v417_v48  ;;  %671 = vrot.lane.b32.xlu0 %v1123_v19, %s1033_s14 }
 0x3a0   :  { %v386_v55 = vmul.f32 1.442695, %v373_v50 }
 0x3a1   :  { %v419_v56 = vmul.f32 %v1009_v47, %v418_v51 }
 0x3a2   :  { %1010 = vpow2.f32 %v386_v55 }
 0x3a3   :  { %v420_v58 = vadd.f32 %v1009_v47, %v419_v56 }
 0x3a5   :  { %v424_v60 = vsel %vm423_vm12, %v1009_v47, %v420_v58  ;;  %v367_v61 = vpop.xlane.xlu1 %366 }
 0x3a6   :  { %v429_v62 = vsel %vm426_vm13, %v428_v59, %v424_v60  ;;  %v375_v63 = vsub.f32 %v1161_v7, %v367_v61 }
 0x3a7   :  { %v430_v0 = vmul.f32 %v1165_v9, %v429_v62  ;;  %692 = vrot.lane.b32.xlu0 %v1134_v30, %s1033_s14 }
 0x3a8   :  { %v1204_v19 = vpop.eup %1010  ;;  %v390_v1 = vmul.f32 1.442695, %v375_v63 }
 0x3a9   :  { %v407_v3 = vsel %vm156_vm8, %v1204_v19, 0.0  ;;  %v536_v4 = vpack.c.bf16 %v430_v0, %v430_v0 }
 0x3aa   :  { %1012 = vpow2.f32 %v390_v1  ;;  %408 = vadd.xlane.f32.xlu2 %v407_v3 }
 0x3ab   :  { %906 = vmatmul.msk.bf16.vlgmr.msra.gmra.mxu1 %vm156_vm8, %v536_v4 }
 0x3b0   :  { %v1209_v5 = vpop.eup %1012 }
 0x3b1   :  { %v413_v7 = vsel %vm156_vm8, %v1209_v5, 0.0 }
 0x3b2   :  { %414 = vadd.xlane.f32.xlu1 %v413_v7 }
 0x3ba   :  { %v397_v8 = vpop.xlane.xlu0 %396 }
 0x3bb   :  { %1014 = vrcp.f32 %v397_v8  ;;  %v442_v12 = vand.u32 2147483648, %v397_v8  ;;  %v440_v15 = vand.u32 2147483647, %v397_v8  ;;  %vm436_vm15 = vweird.f32 %v397_v8 }
 0x3bd   :  { %v443_v2 = vor.u32 1.1754944e-38, %v442_v12  ;;  %vm441_vm2 = vcmp.eq.f32.partialorder %v440_v15, 8.507059e+37 }
 0x3c1   :  { %v1015_v30 = vpop.eup %1014 }
 0x3c2   :  { %v432_v9 = vmul.f32 %v1015_v30, %v397_v8  ;;  %650 = vrot.lane.b32.xlu2 %v1128_v26, %s1033_s14  ;;  %vm437_vm14 = vweird.f32 %v1015_v30 }
 0x3c3   :  { %vm438_vm1 = vmor %vm436_vm15, %vm437_vm14 }
 0x3c4   :  { %v433_v11 = vsub.f32 1.0, %v432_v9 }
 0x3c6   :  { %v434_v13 = vmul.f32 %v1015_v30, %v433_v11 }
 0x3c8   :  { %v435_v16 = vadd.f32 %v1015_v30, %v434_v13 }
 0x3ca   :  { %v439_v17 = vsel %vm438_vm1, %v1015_v30, %v435_v16  ;;  %629 = vrot.lane.b32.xlu2 %v1119_v14, %s1033_s14 }
 0x3cb   :  { %v444_v20 = vsel %vm441_vm2, %v443_v2, %v439_v17  ;;  %608 = vrot.lane.b32.xlu1 %v1115_v10, %s1033_s14 }
 0x3cc   :  { %v445_v26 = vmul.f32 %v1175_v18, %v444_v20 }
 0x3ce   :  { %v537_v21 = vpack.c.bf16 %v445_v26, %v445_v26 }
 0x3d0   :  { %907 = vmatmul.msk.bf16.vlgmr.msra.gmra.mxu2 %vm156_vm8, %v537_v21 }
 0x3ec   :  { %v400_v6 = vpop.xlane.xlu2 %399 }
 0x3ed   :  { %1016 = vrcp.f32 %v400_v6  ;;  %v457_v28 = vand.u32 2147483648, %v400_v6  ;;  %v455_v31 = vand.u32 2147483647, %v400_v6  ;;  %vm451_vm4 = vweird.f32 %v400_v6 }
 0x3ef   :  { %v458_v32 = vor.u32 1.1754944e-38, %v457_v28  ;;  %vm456_vm6 = vcmp.eq.f32.partialorder %v455_v31, 8.507059e+37 }
 0x3f3   :  { %v1017_v22 = vpop.eup %1016 }
 0x3f4   :  { %v447_v23 = vmul.f32 %v1017_v22, %v400_v6  ;;  %vm452_vm3 = vweird.f32 %v1017_v22 }
 0x3f5   :  { %vm453_vm5 = vmor %vm451_vm4, %vm452_vm3 }
 0x3f6   :  { %v448_v25 = vsub.f32 1.0, %v447_v23  ;;  %v406_v27 = vpop.xlane.xlu1 %405 }
 0x3f7   :  { %v487_v62 = vand.u32 2147483648, %v406_v27  ;;  %vm481_vm14 = vweird.f32 %v406_v27  ;;  %v485_v63 = vand.u32 2147483647, %v406_v27 }
 0x3f8   :  { %v449_v29 = vmul.f32 %v1017_v22, %v448_v25 }
 0x3f9   :  { %v488_v7 = vor.u32 1.1754944e-38, %v487_v62  ;;  %vm486_vm1 = vcmp.eq.f32.partialorder %v485_v63, 8.507059e+37 }
 0x3fa   :  { %v450_v14 = vadd.f32 %v1017_v22, %v449_v29 }
 0x3fc   :  { %v454_v10 = vsel %vm453_vm5, %v1017_v22, %v450_v14 }
 0x3fd   :  { %v459_v18 = vsel %vm456_vm6, %v458_v32, %v454_v10 }
 0x3fe   :  { %v460_v33 = vmul.f32 %v1179_v24, %v459_v18  ;;  %v412_v34 = vpop.xlane.xlu1 %411  ;;  %v1223_v43 = vpop.xlane.xlu0 %402 }
 0x3ff   :  { %1018 = vrcp.f32 %v412_v34  ;;  %v517_v42 = vand.u32 2147483648, %v412_v34  ;;  %v515_v45 = vand.u32 2147483647, %v412_v34  ;;  %vm511_vm10 = vweird.f32 %v412_v34 }
 0x400   :  { %v538_v36 = vpack.c.bf16 %v460_v33, %v460_v33  ;;  %1020 = vrcp.f32 %v406_v27  ;;  %v472_v32 = vand.u32 2147483648, %v1223_v43  ;;  %v470_v10 = vand.u32 2147483647, %v1223_v43 }
 0x401   :  { %v518_v47 = vor.u32 1.1754944e-38, %v517_v42  ;;  %vm516_vm12 = vcmp.eq.f32.partialorder %v515_v45, 8.507059e+37  ;;  %1022 = vrcp.f32 %v1223_v43 }
 0x402   :  { %908 = vmatmul.msk.bf16.vlgmr.msra.gmra.mxu3 %vm156_vm8, %v538_v36  ;;  %v473_v33 = vor.u32 1.1754944e-38, %v472_v32 }
 0x405   :  { %v1019_v37 = vpop.eup %1018 }
 0x406   :  { %v507_v38 = vmul.f32 %v1019_v37, %v412_v34  ;;  %vm512_vm7 = vweird.f32 %v1019_v37  ;;  %v1021_v52 = vpop.eup %1020 }
 0x407   :  { %vm513_vm11 = vmor %vm511_vm10, %vm512_vm7  ;;  %v477_v56 = vmul.f32 %v1021_v52, %v406_v27  ;;  %vm482_vm13 = vweird.f32 %v1021_v52  ;;  %v1023_v61 = vpop.eup %1022  ;;  %vm466_vm7 = vweird.f32 %v1223_v43 }
 0x408   :  { %v508_v40 = vsub.f32 1.0, %v507_v38  ;;  %vm483_vm15 = vmor %vm481_vm14, %vm482_vm13  ;;  %v462_v4 = vmul.f32 %v1023_v61, %v1223_v43  ;;  %vm467_vm6 = vweird.f32 %v1023_v61 }
 0x409   :  { %v478_v57 = vsub.f32 1.0, %v477_v56  ;;  %vm468_vm10 = vmor %vm466_vm7, %vm467_vm6 }
 0x40a   :  { %v509_v44 = vmul.f32 %v1019_v37, %v508_v40  ;;  %v463_v16 = vsub.f32 1.0, %v462_v4 }
 0x40b   :  { %v479_v59 = vmul.f32 %v1021_v52, %v478_v57 }
 0x40c   :  { %v510_v46 = vadd.f32 %v1019_v37, %v509_v44  ;;  %v464_v22 = vmul.f32 %v1023_v61, %v463_v16 }
 0x40d   :  { %v480_v60 = vadd.f32 %v1021_v52, %v479_v59 }
 0x40e   :  { %v514_v24 = vsel %vm513_vm11, %v1019_v37, %v510_v46  ;;  %v465_v14 = vadd.f32 %v1023_v61, %v464_v22  ;;  %vm471_vm11 = vcmp.eq.f32.partialorder %v470_v10, 8.507059e+37 }
 0x40f   :  { %v519_v48 = vsel %vm516_vm12, %v518_v47, %v514_v24  ;;  %v484_v3 = vsel %vm483_vm15, %v1021_v52, %v480_v60  ;;  %v920_v60 = vld [vmem:[%s1312_s1 + $0x10] sm:$0xf] }
 0x410   :  { %v520_v49 = vmul.f32 %v1187_v39, %v519_v48  ;;  %v489_v12 = vsel %vm486_vm1, %v488_v7, %v484_v3  ;;  %v469_v18 = vsel %vm468_vm10, %v1023_v61, %v465_v14  ;;  %v952_v61 = vld [vmem:[%s1312_s1 + $0x14] sm:$0xf0]  ;;  %v916_v7 = vld [vmem:[%s1312_s1] sm:$0xf]  ;;  %vm742_vm1 = vcmask 195584  }
 0x411   :  { %v672_v50 = vpop.permute.xlu0 %671  ;;  %v490_v20 = vmul.f32 %v1183_v35, %v489_v12  ;;  %v474_v34 = vsel %vm471_vm11, %v473_v33, %v469_v18  ;;  %v921_v62 = vor.u32 %v952_v61, %v920_v60  ;;  %v929_v18 = vld [vmem:[%s1312_s1 + $0x14] sm:$0xf]  ;;  %v925_v33 = vld [vmem:[%s1312_s1 + $0x4] sm:$0xf] }
 0x412   :  { %v677_v51 = vsel %vm549_vm9, %v672_v50, 0  ;;  %v542_v55 = vpack.c.bf16 %v520_v49, %v520_v49  ;;  %v475_v37 = vmul.f32 %v1190_v41, %v474_v34  ;;  %v953_v34 = vld [vmem:[%s1312_s1 + $0x8] sm:$0xf0]  ;;  %v989_v60 = vld [vmem:[%s1311_s3 + $0x5] ss:$0 sm:$0xff] }
 0x413   :  { %686 = vmatpush.bf16.msrb.mxu3 %v677_v51  ;;  %v540_v29 = vpack.c.bf16 %v490_v20, %v490_v20  ;;  %763 = vrot.lane.b32.xlu2 %v921_v62, %s1034_s19 }
 0x414   :  { %v539_v46 = vpack.c.bf16 %v475_v37, %v475_v37 }
 0x416   :  { %912 = vmatmul.msk.bf16.vlgmr.msrb.gmra.mxu3 %vm156_vm8, %v542_v55 }
 0x419   :  { %v693_v38 = vpop.permute.xlu0 %692 }
 0x41a   :  { %v698_v45 = vsel %vm549_vm9, %v693_v38, 0  ;;  %v987_v38 = vld [vmem:[%s1311_s3 + $0x3] ss:$0 sm:$0xff] }
 0x41d   :  { %v409_v58 = vpop.xlane.xlu2 %408 }
 0x41e   :  { %1024 = vrcp.f32 %v409_v58  ;;  %v502_v9 = vand.u32 2147483648, %v409_v58  ;;  %v500_v15 = vand.u32 2147483647, %v409_v58  ;;  %vm496_vm3 = vweird.f32 %v409_v58 }
 0x420   :  { %v503_v26 = vor.u32 1.1754944e-38, %v502_v9  ;;  %vm501_vm5 = vcmp.eq.f32.partialorder %v500_v15, 8.507059e+37 }
 0x424   :  { %v1025_v39 = vpop.eup %1024 }
 0x425   :  { %v492_v0 = vmul.f32 %v1025_v39, %v409_v58  ;;  %v651_v1 = vpop.permute.xlu2 %650  ;;  %vm497_vm2 = vweird.f32 %v1025_v39  ;;  %v415_v2 = vpop.xlane.xlu1 %414 }
 0x426   :  { %v656_v30 = vsel %vm549_vm9, %v651_v1, 0  ;;  %vm498_vm4 = vmor %vm496_vm3, %vm497_vm2  ;;  %1026 = vrcp.f32 %v415_v2  ;;  %v532_v47 = vand.u32 2147483648, %v415_v2  ;;  %vm526_vm13 = vweird.f32 %v415_v2 }
 0x427   :  { %v493_v8 = vsub.f32 1.0, %v492_v0  ;;  %665 = vmatpush.bf16.msrb.mxu2 %v656_v30  ;;  %v530_v24 = vand.u32 2147483647, %v415_v2 }
 0x428   :  { %v1231_v11 = vpop.f32.mrf.mxu1  ;;  %v533_v41 = vor.u32 1.1754944e-38, %v532_v47 }
 0x429   :  { %v494_v13 = vmul.f32 %v1025_v39, %v493_v8  ;;  %vm531_vm15 = vcmp.eq.f32.partialorder %v530_v24, 8.507059e+37  ;;  %v951_v8 = vld [vmem:[%s1312_s1 + $0x4] sm:$0xf0] }
 0x42a   :  { %v917_v30 = vor.u32 %v951_v8, %v916_v7 }
 0x42b   :  { %v495_v17 = vadd.f32 %v1025_v39, %v494_v13 }
 0x42c   :  { %v1027_v35 = vpop.eup %1026 }
 0x42d   :  { %v499_v21 = vsel %vm498_vm4, %v1025_v39, %v495_v17  ;;  %v630_v6 = vpop.permute.xlu2 %629  ;;  %vm527_vm12 = vweird.f32 %v1027_v35 }
 0x42e   :  { %v504_v23 = vsel %vm501_vm5, %v503_v26, %v499_v21  ;;  %v635_v25 = vsel %vm549_vm9, %v630_v6, 0  ;;  %vm528_vm14 = vmor %vm526_vm13, %vm527_vm12 }
 0x42f   :  { %v505_v27 = vmul.f32 %v1204_v19, %v504_v23  ;;  %644 = vmatpush.bf16.msrb.mxu1 %v635_v25  ;;  %v522_v19 = vmul.f32 %v1027_v35, %v415_v2 }
 0x430   :  { %v564_v28 = vpop.f32.mrf.mxu1 }
 0x431   :  { %v541_v31 = vpack.c.bf16 %v505_v27, %v505_v27  ;;  %v523_v36 = vsub.f32 1.0, %v522_v19 }
 0x432   :  { %910 = vmatmul.msk.bf16.vlgmr.msrb.gmra.mxu1 %vm156_vm8, %v540_v29 }
 0x433   :  { %911 = vmatmul.msk.bf16.vlgmr.msrb.gmra.mxu2 %vm156_vm8, %v541_v31  ;;  %v524_v42 = vmul.f32 %v1027_v35, %v523_v36  ;;  %v926_v36 = vor.u32 %v953_v34, %v925_v33 }
 0x435   :  { %v525_v43 = vadd.f32 %v1027_v35, %v524_v42  ;;  %v785_v42 = vstv %s1313_s4 }
 0x437   :  { %v529_v48 = vsel %vm528_vm14, %v1027_v35, %v525_v43 }
 0x438   :  { %v534_v49 = vsel %vm531_vm15, %v533_v41, %v529_v48  ;;  %v958_v41 = vld [vmem:[%s1314_s2 + $0x18] sm:$0xff] }
 0x439   :  { %v535_v50 = vmul.f32 %v1209_v5, %v534_v49  ;;  %869 = vmatpush.bf16.msra.mxu3 %v958_v41  ;;  %v957_v49 = vld [vmem:[%s1314_s2 + $0x10] sm:$0xff] }
 0x43b   :  { %v543_v51 = vpack.c.bf16 %v535_v50, %v535_v50  ;;  %v956_v50 = vld [vmem:[%s1314_s2 + $0x8] sm:$0xff] }
 0x43d   :  { %v609_v40 = vpop.permute.xlu1 %608  ;;  %870 = vmatpush.bf16.msra.mxu3 %v957_v49 }
 0x43e   :  { %v614_v44 = vsel %vm549_vm9, %v609_v40, 0  ;;  %vm739_vm9 = vcmask 130048  }
 0x43f   :  { %623 = vmatpush.bf16.msrb.mxu0 %v614_v44 }
 0x441   :  { %871 = vmatpush.bf16.msra.mxu3 %v956_v50 }
 0x442   :  { %909 = vmatmul.msk.bf16.vlgmr.msrb.gmra.mxu0 %vm156_vm8, %v539_v46 }
 0x443   :  { %707 = vmatpush.bf16.msra.mxu0 %v698_v45 }
 0x452   :  { %913 = vmatmul.msk.bf16.vlgmr.msra.gmra.mxu0 %vm156_vm8, %v543_v51  ;;  %v988_v51 = vld [vmem:[%s1311_s3 + $0x4] ss:$0 sm:$0xff] }
 0x453   :  { %v583_v52 = vpop.f32.mrf.mxu2 }
 0x45b   :  { %v585_v55 = vpop.f32.mrf.mxu2 }
 0x46d   :  { %v764_v16 = vpop.permute.xlu2 %763 }
 0x46e   :  { %776 = vmatpush.bf16.msra.mxu1 %v764_v16 }
 0x485   :  { %v604_v56 = vpop.f32.mrf.mxu3 }
 0x48d   :  { %v606_v57 = vpop.f32.mrf.mxu3 }
 0x499   :  { %v688_v58 = vpop.f32.mrf.mxu3 }
 0x4a1   :  { %v690_v59 = vpop.f32.mrf.mxu3 }
 0x4af   :  { %v646_v5 = vpop.f32.mrf.mxu1 }
 0x4b6   :  { %v667_v39 = vpop.f32.mrf.mxu2 }
 0x4b7   :  { %v974_v63 = vpack.i.bf16 %v667_v39, %v646_v5  ;;  %v648_v0 = vpop.f32.mrf.mxu1 }
 0x4b9   :  { %975 = vrot.lane.b32.xlu1 %v974_v63, %s1035_s20 }
 0x4be   :  { %v669_v1 = vpop.f32.mrf.mxu2 }
 0x4bf   :  { %v625_v3 = vpop.f32.mrf.mxu0 }
 0x4c0   :  { %v969_v4 = vpack.i.bf16 %v625_v3, %v604_v56 }
 0x4c2   :  { %970 = vrot.lane.b32.xlu0 %v969_v4, %s1036_s21 }
 0x4c7   :  { %v627_v9 = vpop.f32.mrf.mxu0 }
 0x4ca   :  { %761 = vrot.lane.b32.xlu0 %v917_v30, %s1034_s19 }
 0x4cf   :  { %v709_v12 = vpop.f32.mrf.mxu0 }
 0x4d0   :  { %v979_v13 = vpack.i.bf16 %v709_v12, %v688_v58 }
 0x4d2   :  { %980 = vrot.lane.b32.xlu2 %v979_v13, %s1037_s25 }
 0x4d7   :  { %v711_v15 = vpop.f32.mrf.mxu0 }
 0x52b   :  { %v976_v2 = vpop.permute.xlu1 %975 }
 0x52c   :  { %v978_v21 = vunpack.i.h.bf16 %v976_v2  ;;  %v977_v6 = vunpack.i.l.bf16 %v976_v2  ;;  %v981_v22 = vpop.permute.xlu2 %980 }
 0x52d   :  { %v983_v29 = vunpack.i.h.bf16 %v981_v22  ;;  %v982_v31 = vunpack.i.l.bf16 %v981_v22 }
 0x534   :  { %v971_v17 = vpop.permute.xlu0 %970 }
 0x535   :  { %v973_v20 = vunpack.i.h.bf16 %v971_v17  ;;  %v972_v26 = vunpack.i.l.bf16 %v971_v17 }
 0x537   :  { %v738_v23 = vsel %vm156_vm8, %v583_v52, %v973_v20  ;;  %v737_v25 = vsel %vm156_vm8, %v1231_v11, %v972_v26  ;;  %v954_v11 = vld [vmem:[%s1312_s1 + $0x18] sm:$0xf0]  ;;  %vm861_vm8 = vcmask 523264  }
 0x538   :  { %v740_v27 = vsel %vm739_vm9, %v737_v25, %v977_v6  ;;  %v741_v28 = vsel %vm739_vm9, %v738_v23, %v978_v21  ;;  %v930_v19 = vor.u32 %v954_v11, %v929_v18 }
 0x539   :  { %v743_v14 = vsel %vm742_vm1, %v740_v27, %v982_v31  ;;  %v744_v35 = vsel %vm742_vm1, %v741_v28, %v983_v29 }
 0x53a   :  { %v749_v10 = vpack.c.bf16 %v744_v35, %v743_v14  ;;  %817 = vmatpush.bf16.msra.mxu2 %v930_v19 }
 0x53c   :  { %v762_v32 = vpop.permute.xlu0 %761 }
 0x53d   :  { %777 = vmatpush.bf16.msra.mxu1 %v762_v32 }
 0x53e   :  { %818 = vmatpush.bf16.msra.mxu2 %v926_v36 }
 0x540   :  { %922 = vmatmul.msk.bf16.vlgmr.msra.gmra.mxu1 %vm30_vm0, %v749_v10 }
 0x5bd   :  { %v779_v37 = vpop.f32.mrf.mxu1 }
 0x5be   :  { %v780_v40 = vadd.f32 %v987_v38, %v779_v37 }
 0x5c0   :  { %v786_v45 = vmul.f32 %v785_v42, %v780_v40 }
 0x5c2   :  { %v788_v47 = vadd.f32 %v786_v45, %v1096_v53  ;;  %v955_v53 = vld [vmem:[%s1314_s2] sm:$0xff] }
 0x5c3   :  { %872 = vmatpush.bf16.msra.mxu3 %v955_v53 }
 0x5c5   :  { %v781_v44 = vpop.f32.mrf.mxu1 }
 0x5c6   :  { %v782_v46 = vadd.f32 %v987_v38, %v781_v44 }
 0x5c8   :  { %v787_v43 = vmul.f32 %v785_v42, %v782_v46 }
 0x5ca   :  { %v789_v24 = vadd.f32 %v787_v43, %v1098_v54 }
 0x5cc   :  { %v794_v48 = vpack.c.bf16 %v789_v24, %v788_v47 }
 0x5ce   :  { %931 = vmatmul.msk.bf16.vlgmr.msra.gmra.mxu2 %vm30_vm0, %v794_v48 }
 0x651   :  { %v820_v54 = vpop.f32.mrf.mxu2 }
 0x652   :  { %v821_v52 = vadd.f32 %v988_v51, %v820_v54 }
 0x654   :  { %v825_v57 = vmax.f32 %v821_v52, 0.0 }
 0x659   :  { %v822_v55 = vpop.f32.mrf.mxu2 }
 0x65a   :  { %v823_v56 = vadd.f32 %v988_v51, %v822_v55 }
 0x65c   :  { %v826_v58 = vmax.f32 %v823_v56, 0.0 }
 0x65e   :  { %v827_v59 = vpack.c.bf16 %v826_v58, %v825_v57 }
 0x660   :  { %948 = vmatmul.msk.bf16.vlgmr.msra.gmra.mxu3 %vm861_vm8, %v827_v59 }
 0x6e3   :  { %v874_v61 = vpop.f32.mrf.mxu3 }
 0x6e4   :  { %v875_v62 = vadd.f32 %v989_v60, %v874_v61 }
 0x6e6   :  { %v879_v5 = vmul.f32 %v875_v62, %v785_v42 }
 0x6e8   :  { %v881_v39 = vadd.f32 %v879_v5, %v788_v47 }
 0x6ea   :  { %883 = vst.msk [vmem:[%s1315_s5] sm:$0xff] %vm30_vm0, %v881_v39 }
 0x6eb   :  { %v876_v63 = vpop.f32.mrf.mxu3 }
 0x6ec   :  { %v877_v0 = vadd.f32 %v989_v60, %v876_v63 }
 0x6ee   :  { %v880_v1 = vmul.f32 %v877_v0, %v785_v42 }
 0x6f0   :  { %v882_v3 = vadd.f32 %v880_v1, %v789_v24 }
 0x6f2   :  { %884 = vst.msk [vmem:[%s1315_s5 + $0x8] sm:$0xff] %vm30_vm0, %v882_v3 }

</bundles_post_ra>
